<compile_context>
chip_gen: v5e
topology: v5e:2x2
jax: 0.10.0
libtpu: 0.0.40
codegen_flags: <defaults>
</compile_context>

<pallas_src>
import functools

import jax
import jax.numpy as jnp
from jax.experimental import pallas as pl
from jax.experimental.pallas import tpu as pltpu

HIDDEN_LAYER = 32   # TODO(synk): stand-in for cf.HIDDEN_LAYER (config not provided).
FC2_OUT = 5
PACK = 8            # samples packed per lane-row: (B, d) -> (B/8, 8*d), free reshape.


def dqn_kernel(x_ref, w1_ref, b1_ref, w2_ref, b2_ref, w3_ref, b3_ref, o_ref):
    """One (tb//PACK, PACK*input_d) packed batch tile.

    Weights are block-diagonal kron(I_PACK, W.T), so a plain row-major matmul
    applies the layer independently to each of the PACK samples packed into a
    lane-row.  Dots accumulate in f32; bias-add / ReLU stay in f32 (bf16
    weights are fine even on v5e, whose VPU has no bf16 path).
    """
    x = x_ref[...].astype(w1_ref.dtype)     # in-kernel cast: no extra HBM pass

    # fc1 + relu: (TBp, PACK*in) @ (PACK*in, PACK*H) -> (TBp, PACK*H)
    h1 = jnp.dot(x, w1_ref[...], preferred_element_type=jnp.float32) + b1_ref[...]
    h1 = jnp.maximum(h1, 0.0)

    # fc2 + relu: (TBp, PACK*H) @ (PACK*H, PACK*5) -> (TBp, PACK*5)
    h2 = jnp.dot(h1.astype(w2_ref.dtype), w2_ref[...],
                 preferred_element_type=jnp.float32) + b2_ref[...]
    h2 = jnp.maximum(h2, 0.0)

    # head: (TBp, PACK*5) @ (PACK*5, PACK*out) -> (TBp, PACK*out)
    out = jnp.dot(h2.astype(w3_ref.dtype), w3_ref[...],
                  preferred_element_type=jnp.float32) + b3_ref[...]
    o_ref[...] = out.astype(o_ref.dtype)


def _round_up(x, m):
    return (x + m - 1) // m * m


def _pack_params(params, compute_dtype):
    """PyTorch-layout (out,in) weights -> kron(I_PACK, W.T) block-diagonal; tiled biases."""
    w1, b1, w2, b2, w3, b3 = params
    eye = jnp.eye(PACK, dtype=compute_dtype)
    w1p = jnp.kron(eye, w1.T.astype(compute_dtype))     # (PACK*in, PACK*H)
    w2p = jnp.kron(eye, w2.T.astype(compute_dtype))     # (PACK*H,  PACK*5)
    w3p = jnp.kron(eye, w3.T.astype(compute_dtype))     # (PACK*5,  PACK*out)
    b1p = jnp.tile(b1.astype(jnp.float32).reshape(1, -1), (1, PACK))  # (1, PACK*H)
    b2p = jnp.tile(b2.astype(jnp.float32).reshape(1, -1), (1, PACK))  # (1, PACK*5)
    b3p = jnp.tile(b3.astype(jnp.float32).reshape(1, -1), (1, PACK))  # (1, PACK*out)
    return w1p, b1p, w2p, b2p, w3p, b3p


def dqn_forward(x, params, input_d, outputs, block_b=8192,
                compute_dtype=jnp.bfloat16):
    """Flatten like x.view(-1, input_d) and run the packed kernel.

    block_b:       batch tile (rows of x per grid step).  8192 is a good default
                   for v5e/v6e; v7x can use 16384-32768 (still well under its
                   32 MiB scoped VMEM default).
    compute_dtype: MXU input dtype for x / weights; accumulation, bias and ReLU
                   are always f32.
    """
    x2d = x.reshape(-1, input_d)
    B = x2d.shape[0]
    GR = 512                        # tile granule: keeps tb // PACK a multiple of 8

    tb = min(block_b, _round_up(B, GR))
    if B > 2 * GR:
        # >= 2 grid steps so ("parallel",) can actually use both TensorCores on
        # v7x (harmless on single-TC v5e/v6e).
        tb = min(tb, _round_up((B + 1) // 2, GR))
    tb = max(tb, GR)
    Bp = _round_up(B, tb)

    if Bp != B:
        x2d = jnp.pad(x2d, ((0, Bp - B), (0, 0)))
    # Free, contiguous re-view: 8 consecutive samples per 128-wide lane-row.
    xp = x2d.reshape(Bp // PACK, PACK * input_d)

    w1p, b1p, w2p, b2p, w3p, b3p = _pack_params(params, compute_dtype)

    tbp = tb // PACK
    grid = (Bp // tb,)

    def resident(a):
        # Full-array block, same block every grid step -> stays VMEM-resident.
        return pl.BlockSpec(a.shape, lambda i: (0, 0))

    flops = 2 * Bp * (input_d * HIDDEN_LAYER + HIDDEN_LAYER * FC2_OUT
                      + FC2_OUT * outputs)
    bytes_accessed = int(
        xp.size * xp.dtype.itemsize
        + Bp * outputs * 4
        + sum(int(a.size) * a.dtype.itemsize
              for a in (w1p, b1p, w2p, b2p, w3p, b3p)))

    outp = pl.pallas_call(
        dqn_kernel,
        out_shape=jax.ShapeDtypeStruct((Bp // PACK, PACK * outputs), jnp.float32),
        grid=grid,
        in_specs=[
            pl.BlockSpec((tbp, PACK * input_d), lambda i: (i, 0)),   # packed x tile
            resident(w1p), resident(b1p),                            # fc1
            resident(w2p), resident(b2p),                            # fc2
            resident(w3p), resident(b3p),                            # head
        ],
        out_specs=pl.BlockSpec((tbp, PACK * outputs), lambda i: (i, 0)),
        compiler_params=pltpu.CompilerParams(
            dimension_semantics=("parallel",),
        ),
        cost_estimate=pl.CostEstimate(
            flops=flops, transcendentals=0, bytes_accessed=bytes_accessed),
    )(xp, w1p, b1p, w2p, b2p, w3p, b3p)

    out = outp.reshape(Bp, outputs)          # free re-view back to sample-major
    return out[:B] if Bp != B else out


def init_linear(key, fan_in, fan_out):
    """nn.Linear-style init U(-1/sqrt(fan_in), 1/sqrt(fan_in)).

    Returns W with PyTorch shape (fan_out, fan_in) and b with shape (fan_out, 1).
    """
    kw, kb = jax.random.split(key)
    bound = 1.0 / jnp.sqrt(jnp.float32(fan_in))
    w = jax.random.uniform(kw, (fan_out, fan_in), jnp.float32, -bound, bound)
    b = jax.random.uniform(kb, (fan_out, 1), jnp.float32, -bound, bound)
    return w, b


def make_dqn_params(key, input_d, outputs):
    k1, k2, k3 = jax.random.split(key, 3)
    w1, b1 = init_linear(k1, input_d, HIDDEN_LAYER)
    w2, b2 = init_linear(k2, HIDDEN_LAYER, FC2_OUT)
    w3, b3 = init_linear(k3, FC2_OUT, outputs)
    return (w1, b1, w2, b2, w3, b3)


def dqn_reference(x, params, input_d):
    """Pure-JAX reference (PyTorch layout: y = x @ W.T + b.T)."""
    w1, b1, w2, b2, w3, b3 = params
    x2d = x.reshape(-1, input_d)
    h1 = jnp.maximum(x2d @ w1.T + b1.T, 0.0)
    h2 = jnp.maximum(h1 @ w2.T + b2.T, 0.0)
    return h2 @ w3.T + b3.T


if __name__ == "__main__":
    input_d = 16
    outputs = 4

    key = jax.random.PRNGKey(0)
    kx, kx2, kp = jax.random.split(key, 3)
    params = make_dqn_params(kp, input_d, outputs)

    fwd_bf16 = jax.jit(functools.partial(dqn_forward, input_d=input_d, outputs=outputs))
    fwd_f32 = jax.jit(functools.partial(dqn_forward, input_d=input_d, outputs=outputs,
                                        compute_dtype=jnp.float32))

    # Small batch (pads 2 -> 512 rows inside the wrapper).
    x = jax.random.normal(kx, (2, input_d), jnp.float32)
    ref = dqn_reference(x, params, input_d)

    out_f32 = fwd_f32(x, params)
    jax.block_until_ready(out_f32)
    assert out_f32.shape == (2, outputs), out_f32.shape
    assert jnp.allclose(out_f32, ref, atol=1e-4, rtol=1e-4), "f32 mismatch vs reference (B=2)"

    out_bf16 = fwd_bf16(x, params)
    jax.block_until_ready(out_bf16)
    assert out_bf16.shape == (2, outputs), out_bf16.shape
    assert jnp.allclose(out_bf16, ref, atol=5e-2, rtol=5e-2), "bf16 mismatch vs reference (B=2)"

    # Ragged batch not a multiple of the tile, with a leading shape that
    # exercises the x.view(-1, input_d) flattening.
    x2 = jax.random.normal(kx2, (3, 100, input_d), jnp.float32)
    ref2 = dqn_reference(x2, params, input_d)

    out2_f32 = fwd_f32(x2, params)
    jax.block_until_ready(out2_f32)
    assert out2_f32.shape == (300, outputs), out2_f32.shape
    assert jnp.allclose(out2_f32, ref2, atol=1e-4, rtol=1e-4), "f32 mismatch vs reference (B=300)"

    out2_bf16 = fwd_bf16(x2, params)
    jax.block_until_ready(out2_bf16)
    assert out2_bf16.shape == (300, outputs), out2_bf16.shape
    assert jnp.allclose(out2_bf16, ref2, atol=5e-2, rtol=5e-2), "bf16 mismatch vs reference (B=300)"

    print("KERNEL_OK")
</pallas_src>

<mosaic_0001>
module attributes {stable_mosaic.version = 11 : i64} {
  func.func @dqn_kernel(%arg0: i32, %arg1: memref<64x128xf32, #tpu.memory_space<vmem>>, %arg2: memref<128x256xf32, #tpu.memory_space<vmem>>, %arg3: memref<1x256xf32, #tpu.memory_space<vmem>>, %arg4: memref<256x40xf32, #tpu.memory_space<vmem>>, %arg5: memref<1x40xf32, #tpu.memory_space<vmem>>, %arg6: memref<40x32xf32, #tpu.memory_space<vmem>>, %arg7: memref<1x32xf32, #tpu.memory_space<vmem>>, %arg8: memref<64x32xf32, #tpu.memory_space<vmem>>) attributes {dimension_semantics = [#tpu.dimension_semantics<parallel>], iteration_bounds = array<i64: 1>, scalar_prefetch = 0 : i64, scratch_operands = 0 : i64, tpu.core_type = #tpu.core_type<tc>, window_params = [{transform_indices = @transform_0, window_bounds = array<i64: 64, 128>}, {pipeline_mode = #tpu.pipeline_mode<synchronous>, transform_indices = @transform_1, window_bounds = array<i64: 128, 256>}, {pipeline_mode = #tpu.pipeline_mode<synchronous>, transform_indices = @transform_2, window_bounds = array<i64: 1, 256>}, {pipeline_mode = #tpu.pipeline_mode<synchronous>, transform_indices = @transform_3, window_bounds = array<i64: 256, 40>}, {pipeline_mode = #tpu.pipeline_mode<synchronous>, transform_indices = @transform_4, window_bounds = array<i64: 1, 40>}, {pipeline_mode = #tpu.pipeline_mode<synchronous>, transform_indices = @transform_5, window_bounds = array<i64: 40, 32>}, {pipeline_mode = #tpu.pipeline_mode<synchronous>, transform_indices = @transform_6, window_bounds = array<i64: 1, 32>}, {transform_indices = @transform_7, window_bounds = array<i64: 64, 32>}]} {
    %c0 = arith.constant 0 : index
    %c0_0 = arith.constant 0 : index
    %0 = vector.load %arg1[%c0, %c0_0] : memref<64x128xf32, #tpu.memory_space<vmem>>, vector<64x128xf32>
    %c0_1 = arith.constant 0 : index
    %c0_2 = arith.constant 0 : index
    %1 = vector.load %arg2[%c0_1, %c0_2] : memref<128x256xf32, #tpu.memory_space<vmem>>, vector<128x256xf32>
    %cst = arith.constant dense<0.000000e+00> : vector<64x256xf32>
    %2 = tpu.matmul %0, %1, %cst {dimension_numbers = #tpu.dot_dimension_numbers<[1], [0], [0], [1], [0, 0, 1, 1], [], []>} : vector<64x128xf32>, vector<128x256xf32>, vector<64x256xf32> -> vector<64x256xf32>
    %c0_3 = arith.constant 0 : index
    %c0_4 = arith.constant 0 : index
    %3 = vector.load %arg3[%c0_3, %c0_4] : memref<1x256xf32, #tpu.memory_space<vmem>>, vector<1x256xf32>
    %4 = vector.broadcast %3 : vector<1x256xf32> to vector<64x256xf32>
    %5 = arith.addf %2, %4 : vector<64x256xf32>
    %cst_5 = arith.constant 0.000000e+00 : f32
    %6 = vector.broadcast %cst_5 : f32 to vector<64x256xf32>
    %7 = arith.maximumf %5, %6 : vector<64x256xf32>
    %c0_6 = arith.constant 0 : index
    %c0_7 = arith.constant 0 : index
    %8 = vector.load %arg4[%c0_6, %c0_7] : memref<256x40xf32, #tpu.memory_space<vmem>>, vector<256x40xf32>
    %cst_8 = arith.constant dense<0.000000e+00> : vector<64x40xf32>
    %9 = tpu.matmul %7, %8, %cst_8 {dimension_numbers = #tpu.dot_dimension_numbers<[1], [0], [0], [1], [0, 0, 1, 1], [], []>} : vector<64x256xf32>, vector<256x40xf32>, vector<64x40xf32> -> vector<64x40xf32>
    %c0_9 = arith.constant 0 : index
    %c0_10 = arith.constant 0 : index
    %10 = vector.load %arg5[%c0_9, %c0_10] : memref<1x40xf32, #tpu.memory_space<vmem>>, vector<1x40xf32>
    %11 = vector.broadcast %10 : vector<1x40xf32> to vector<64x40xf32>
    %12 = arith.addf %9, %11 : vector<64x40xf32>
    %cst_11 = arith.constant 0.000000e+00 : f32
    %13 = vector.broadcast %cst_11 : f32 to vector<64x40xf32>
    %14 = arith.maximumf %12, %13 : vector<64x40xf32>
    %c0_12 = arith.constant 0 : index
    %c0_13 = arith.constant 0 : index
    %15 = vector.load %arg6[%c0_12, %c0_13] : memref<40x32xf32, #tpu.memory_space<vmem>>, vector<40x32xf32>
    %cst_14 = arith.constant dense<0.000000e+00> : vector<64x32xf32>
    %16 = tpu.matmul %14, %15, %cst_14 {dimension_numbers = #tpu.dot_dimension_numbers<[1], [0], [0], [1], [0, 0, 1, 1], [], []>} : vector<64x40xf32>, vector<40x32xf32>, vector<64x32xf32> -> vector<64x32xf32>
    %c0_15 = arith.constant 0 : index
    %c0_16 = arith.constant 0 : index
    %17 = vector.load %arg7[%c0_15, %c0_16] : memref<1x32xf32, #tpu.memory_space<vmem>>, vector<1x32xf32>
    %18 = vector.broadcast %17 : vector<1x32xf32> to vector<64x32xf32>
    %19 = arith.addf %16, %18 : vector<64x32xf32>
    %c0_17 = arith.constant 0 : index
    %c0_18 = arith.constant 0 : index
    %20 = vector.load %arg8[%c0_17, %c0_18] : memref<64x32xf32, #tpu.memory_space<vmem>>, vector<64x32xf32>
    tpu.vector_store %arg8[%c0_17, %c0_18], %19 {strides = array<i32>} : memref<64x32xf32, #tpu.memory_space<vmem>>, vector<64x32xf32>,
    return
  }
  func.func @transform_0(%arg0: i32) -> (i32, i32) {
    %c0_i32 = arith.constant 0 : i32
    %c0_i32_0 = arith.constant 0 : i32
    return %arg0, %c0_i32 : i32, i32
  }
  func.func @transform_1(%arg0: i32) -> (i32, i32) {
    %c0_i32 = arith.constant 0 : i32
    %c0_i32_0 = arith.constant 0 : i32
    %c0_i32_1 = arith.constant 0 : i32
    return %c0_i32, %c0_i32_0 : i32, i32
  }
  func.func @transform_2(%arg0: i32) -> (i32, i32) {
    %c0_i32 = arith.constant 0 : i32
    %c0_i32_0 = arith.constant 0 : i32
    %c0_i32_1 = arith.constant 0 : i32
    return %c0_i32, %c0_i32_0 : i32, i32
  }
  func.func @transform_3(%arg0: i32) -> (i32, i32) {
    %c0_i32 = arith.constant 0 : i32
    %c0_i32_0 = arith.constant 0 : i32
    %c0_i32_1 = arith.constant 0 : i32
    return %c0_i32, %c0_i32_0 : i32, i32
  }
  func.func @transform_4(%arg0: i32) -> (i32, i32) {
    %c0_i32 = arith.constant 0 : i32
    %c0_i32_0 = arith.constant 0 : i32
    %c0_i32_1 = arith.constant 0 : i32
    return %c0_i32, %c0_i32_0 : i32, i32
  }
  func.func @transform_5(%arg0: i32) -> (i32, i32) {
    %c0_i32 = arith.constant 0 : i32
    %c0_i32_0 = arith.constant 0 : i32
    %c0_i32_1 = arith.constant 0 : i32
    return %c0_i32, %c0_i32_0 : i32, i32
  }
  func.func @transform_6(%arg0: i32) -> (i32, i32) {
    %c0_i32 = arith.constant 0 : i32
    %c0_i32_0 = arith.constant 0 : i32
    %c0_i32_1 = arith.constant 0 : i32
    return %c0_i32, %c0_i32_0 : i32, i32
  }
  func.func @transform_7(%arg0: i32) -> (i32, i32) {
    %c0_i32 = arith.constant 0 : i32
    %c0_i32_0 = arith.constant 0 : i32
    return %arg0, %c0_i32 : i32, i32
  }
}

</mosaic_0001>

<bundles_post_ra>
// kernel: dqn_forward.1
= control target key start
LH: loop header
LB: loop body
LE: loop exit
PB: predicated region body
PF: predicated region fallthrough
CT: control target
= control target key end

     0   :  { %vm305_vm0 = vcmask 326656   ;;  %vm371_vm1 = vcmask 261120   ;;  %s746_s1 = inlined_call_operand.vmem [shape: f32[128,256], index: 1, kind: input, shape index: {}]   ;;  %s747_s0 = inlined_call_operand.vmem [shape: f32[64,128], index: 0, kind: input, shape index: {}]   ;;  %s748_s3 = inlined_call_operand.vmem [shape: f32[256,40], index: 3, kind: input, shape index: {}]   ;;  %s749_s4 = inlined_call_operand.vmem [shape: f32[1,40], index: 4, kind: input, shape index: {}]   ;;  %s750_s2 = inlined_call_operand.vmem [shape: f32[1,256], index: 2, kind: input, shape index: {}]   ;;  %s751_s6 = inlined_call_operand.vmem [shape: f32[1,32], index: 6, kind: input, shape index: {}]   ;;  %s752_s5 = inlined_call_operand.vmem [shape: f32[40,32], index: 5, kind: input, shape index: {}]   ;;  %s753_s7 = inlined_call_operand.vmem [shape: f32[64,32], index: 7, kind: output, shape index: {}]  }
   0x1   :  { %v64_v0 = vld [vmem:[%s746_s1 + $0xf0] sm:$0xff]  ;;  %v62_v1 = vld [vmem:[%s746_s1 + $0xe0] sm:$0xff]  ;;  %v65_v18 = vld [vmem:[%s746_s1 + $0xf8] sm:$0xff] }
   0x2   :  { %72 = vmatpush.msra.mxu0 %v64_v0  ;;  %392 = vmatpush.msra.mxu1 %v64_v0  ;;  %v60_v2 = vld [vmem:[%s746_s1 + $0xd0] sm:$0xff]  ;;  %v58_v3 = vld [vmem:[%s746_s1 + $0xc0] sm:$0xff]  ;;  %v63_v19 = vld [vmem:[%s746_s1 + $0xe8] sm:$0xff] }
   0x3   :  { %393 = vmatpush.msra.mxu2 %v64_v0  ;;  %v56_v4 = vld [vmem:[%s746_s1 + $0xb0] sm:$0xff]  ;;  %v54_v5 = vld [vmem:[%s746_s1 + $0xa0] sm:$0xff]  ;;  %v61_v20 = vld [vmem:[%s746_s1 + $0xd8] sm:$0xff] }
   0x4   :  { %73 = vmatpush.msra.mxu0 %v62_v1  ;;  %394 = vmatpush.msra.mxu1 %v62_v1  ;;  %v52_v6 = vld [vmem:[%s746_s1 + $0x90] sm:$0xff]  ;;  %v50_v7 = vld [vmem:[%s746_s1 + $0x80] sm:$0xff]  ;;  %v59_v21 = vld [vmem:[%s746_s1 + $0xc8] sm:$0xff] }
   0x5   :  { %395 = vmatpush.msra.mxu2 %v62_v1  ;;  %v48_v8 = vld [vmem:[%s746_s1 + $0x70] sm:$0xff]  ;;  %v46_v9 = vld [vmem:[%s746_s1 + $0x60] sm:$0xff]  ;;  %v27_v22 = vld [vmem:[%s747_s0 + $0x8] sm:$0xff] }
   0x6   :  { %74 = vmatpush.msra.mxu0 %v60_v2  ;;  %396 = vmatpush.msra.mxu1 %v60_v2  ;;  %v44_v10 = vld [vmem:[%s746_s1 + $0x50] sm:$0xff]  ;;  %v42_v11 = vld [vmem:[%s746_s1 + $0x40] sm:$0xff]  ;;  %v29_v23 = vld [vmem:[%s747_s0 + $0x18] sm:$0xff] }
   0x7   :  { %397 = vmatpush.msra.mxu2 %v60_v2  ;;  %v40_v12 = vld [vmem:[%s746_s1 + $0x30] sm:$0xff]  ;;  %v38_v13 = vld [vmem:[%s746_s1 + $0x20] sm:$0xff]  ;;  %v57_v24 = vld [vmem:[%s746_s1 + $0xb8] sm:$0xff] }
   0x8   :  { %75 = vmatpush.msra.mxu0 %v58_v3  ;;  %398 = vmatpush.msra.mxu1 %v58_v3  ;;  %v36_v14 = vld [vmem:[%s746_s1 + $0x10] sm:$0xff]  ;;  %v34_v15 = vld [vmem:[%s746_s1] sm:$0xff]  ;;  %v55_v25 = vld [vmem:[%s746_s1 + $0xa8] sm:$0xff] }
   0x9   :  { %399 = vmatpush.msra.mxu2 %v58_v3  ;;  %v26_v16 = vld [vmem:[%s747_s0] sm:$0xff]  ;;  %v28_v17 = vld [vmem:[%s747_s0 + $0x10] sm:$0xff]  ;;  %v53_v26 = vld [vmem:[%s746_s1 + $0x98] sm:$0xff] }
   0xa   :  { %76 = vmatpush.msra.mxu0 %v56_v4  ;;  %400 = vmatpush.msra.mxu1 %v56_v4  ;;  %v51_v27 = vld [vmem:[%s746_s1 + $0x88] sm:$0xff]  ;;  %v30_v28 = vld [vmem:[%s747_s0 + $0x20] sm:$0xff]  ;;  %v49_v29 = vld [vmem:[%s746_s1 + $0x78] sm:$0xff] }
   0xb   :  { %401 = vmatpush.msra.mxu2 %v56_v4  ;;  %v47_v30 = vld [vmem:[%s746_s1 + $0x68] sm:$0xff]  ;;  %v45_v31 = vld [vmem:[%s746_s1 + $0x58] sm:$0xff]  ;;  %v32_v38 = vld [vmem:[%s747_s0 + $0x30] sm:$0xff] }
   0xc   :  { %77 = vmatpush.msra.mxu0 %v54_v5  ;;  %402 = vmatpush.msra.mxu1 %v54_v5  ;;  %v43_v32 = vld [vmem:[%s746_s1 + $0x48] sm:$0xff]  ;;  %v41_v34 = vld [vmem:[%s746_s1 + $0x38] sm:$0xff]  ;;  %v184_v41 = vld [vmem:[%s748_s3 + $0x70] sm:$0xff] }
   0xd   :  { %403 = vmatpush.msra.mxu2 %v54_v5  ;;  %v31_v33 = vld [vmem:[%s747_s0 + $0x28] sm:$0xff]  ;;  %v37_v36 = vld [vmem:[%s746_s1 + $0x18] sm:$0xff]  ;;  %v182_v43 = vld [vmem:[%s748_s3 + $0x60] sm:$0xff] }
   0xe   :  { %78 = vmatpush.msra.mxu0 %v52_v6  ;;  %404 = vmatpush.msra.mxu1 %v52_v6  ;;  %v39_v35 = vld [vmem:[%s746_s1 + $0x28] sm:$0xff]  ;;  %v33_v39 = vld [vmem:[%s747_s0 + $0x38] sm:$0xff]  ;;  %v180_v45 = vld [vmem:[%s748_s3 + $0x50] sm:$0xff] }
   0xf   :  { %405 = vmatpush.msra.mxu2 %v52_v6  ;;  %v35_v37 = vld [vmem:[%s746_s1 + $0x8] sm:$0xff]  ;;  %v185_v40 = vld [vmem:[%s748_s3 + $0x78] sm:$0xff]  ;;  %v178_v47 = vld [vmem:[%s748_s3 + $0x40] sm:$0xff] }
  0x10   :  { %79 = vmatpush.msra.mxu0 %v50_v7  ;;  %406 = vmatpush.msra.mxu1 %v50_v7  ;;  %v183_v42 = vld [vmem:[%s748_s3 + $0x68] sm:$0xff]  ;;  %v181_v44 = vld [vmem:[%s748_s3 + $0x58] sm:$0xff]  ;;  %v176_v49 = vld [vmem:[%s748_s3 + $0x30] sm:$0xff] }
  0x11   :  { %407 = vmatpush.msra.mxu2 %v50_v7  ;;  %v179_v46 = vld [vmem:[%s748_s3 + $0x48] sm:$0xff]  ;;  %v177_v48 = vld [vmem:[%s748_s3 + $0x38] sm:$0xff]  ;;  %v174_v51 = vld [vmem:[%s748_s3 + $0x20] sm:$0xff] }
  0x12   :  { %80 = vmatpush.msra.mxu0 %v48_v8  ;;  %408 = vmatpush.msra.mxu1 %v48_v8  ;;  %v175_v50 = vld [vmem:[%s748_s3 + $0x28] sm:$0xff]  ;;  %v173_v52 = vld [vmem:[%s748_s3 + $0x18] sm:$0xff]  ;;  %v172_v53 = vld [vmem:[%s748_s3 + $0x10] sm:$0xff] }
  0x13   :  { %409 = vmatpush.msra.mxu2 %v48_v8  ;;  %v171_v54 = vld [vmem:[%s748_s3 + $0x8] sm:$0xff]  ;;  %v170_v55 = vld [vmem:[%s748_s3] sm:$0xff]  ;;  %v201_v56 = vld [vmem:[%s748_s3 + $0xf8] sm:$0xff] }
  0x14   :  { %81 = vmatpush.msra.mxu0 %v46_v9  ;;  %410 = vmatpush.msra.mxu1 %v46_v9  ;;  %v200_v57 = vld [vmem:[%s748_s3 + $0xf0] sm:$0xff]  ;;  %v199_v58 = vld [vmem:[%s748_s3 + $0xe8] sm:$0xff]  ;;  %v198_v59 = vld [vmem:[%s748_s3 + $0xe0] sm:$0xff] }
  0x15   :  { %411 = vmatpush.msra.mxu2 %v46_v9  ;;  %247 = vmatpush.msra.mxu3 %v201_v56  ;;  %v197_v60 = vld [vmem:[%s748_s3 + $0xd8] sm:$0xff]  ;;  %v196_v61 = vld [vmem:[%s748_s3 + $0xd0] sm:$0xff]  ;;  %v195_v62 = vld [vmem:[%s748_s3 + $0xc8] sm:$0xff] }
  0x16   :  { %82 = vmatpush.msra.mxu0 %v44_v10  ;;  %412 = vmatpush.msra.mxu1 %v44_v10  ;;  %v194_v63 = vld [vmem:[%s748_s3 + $0xc0] sm:$0xff]  ;;  %v193_v0 = vld [vmem:[%s748_s3 + $0xb8] sm:$0xff]  ;;  %v192_v1 = vld [vmem:[%s748_s3 + $0xb0] sm:$0xff] }
  0x17   :  { %413 = vmatpush.msra.mxu2 %v44_v10  ;;  %248 = vmatpush.msra.mxu3 %v200_v57  ;;  %v191_v2 = vld [vmem:[%s748_s3 + $0xa8] sm:$0xff]  ;;  %v66_v3 = vld [vmem:[%s750_s2] sm:$0x3]  ;;  %v189_v6 = vld [vmem:[%s748_s3 + $0x98] sm:$0xff] }
  0x18   :  { %83 = vmatpush.msra.mxu0 %v42_v11  ;;  %414 = vmatpush.msra.mxu1 %v42_v11  ;;  %v190_v4 = vld [vmem:[%s748_s3 + $0xa0] sm:$0xff]  ;;  %v68_v5 = vperm.slane %v66_v3, 0  ;;  %v188_v7 = vld [vmem:[%s748_s3 + $0x90] sm:$0xff] }
  0x19   :  { %415 = vmatpush.msra.mxu2 %v42_v11  ;;  %249 = vmatpush.msra.mxu3 %v199_v58  ;;  %v187_v11 = vld [vmem:[%s748_s3 + $0x88] sm:$0xff] }
  0x1a   :  { %84 = vmatpush.msra.mxu0 %v40_v12  ;;  %416 = vmatpush.msra.mxu1 %v40_v12 }
  0x1b   :  { %417 = vmatpush.msra.mxu2 %v40_v12  ;;  %250 = vmatpush.msra.mxu3 %v198_v59  ;;  %v300_v59 = vld [vmem:[%s752_s5 + $0x20] sm:$0xff] }
  0x1c   :  { %85 = vmatpush.msra.mxu0 %v38_v13  ;;  %418 = vmatpush.msra.mxu1 %v38_v13 }
  0x1d   :  { %419 = vmatpush.msra.mxu2 %v38_v13  ;;  %251 = vmatpush.msra.mxu3 %v197_v60  ;;  %v186_v13 = vld [vmem:[%s748_s3 + $0x80] sm:$0xff]  ;;  %v299_v60 = vld [vmem:[%s752_s5 + $0x18] sm:$0xff] }
  0x1e   :  { %86 = vmatpush.msra.mxu0 %v36_v14  ;;  %420 = vmatpush.msra.mxu1 %v36_v14 }
  0x1f   :  { %421 = vmatpush.msra.mxu2 %v36_v14  ;;  %252 = vmatpush.msra.mxu3 %v196_v61  ;;  %v298_v61 = vld [vmem:[%s752_s5 + $0x10] sm:$0xff] }
  0x20   :  { %87 = vmatpush.msra.mxu0 %v34_v15  ;;  %422 = vmatpush.msra.mxu1 %v34_v15 }
  0x21   :  { %88 = vmatmul.f32.vlgmr.msra.gmra.mxu0 %v26_v16  ;;  %94 = vmatmul.f32.vlgmr.msra.gmra.mxu1 %v28_v17 }
  0x22   :  { %113 = vmatpush.msrb.mxu1 %v65_v18  ;;  %423 = vmatpush.msra.mxu2 %v34_v15 }
  0x23   :  { %106 = vmatmul.f32.vlgmr.msra.gmra.mxu2 %v32_v38  ;;  %253 = vmatpush.msra.mxu3 %v195_v62  ;;  %v297_v62 = vld [vmem:[%s752_s5 + $0x8] sm:$0xff] }
  0x24   :  { %114 = vmatpush.msrb.mxu1 %v63_v19  ;;  %206 = vmatpush.msrb.mxu2 %v185_v40 }
  0x25   :  { %254 = vmatpush.msra.mxu3 %v194_v63  ;;  %341 = vmatpush.msrb.mxu0 %v300_v59  ;;  %v296_v63 = vld [vmem:[%s752_s5] sm:$0xff] }
  0x26   :  { %115 = vmatpush.msrb.mxu1 %v61_v20  ;;  %207 = vmatpush.msrb.mxu2 %v184_v41 }
  0x27   :  { %255 = vmatpush.msra.mxu3 %v193_v0  ;;  %342 = vmatpush.msrb.mxu0 %v299_v60 }
  0x28   :  { %116 = vmatpush.msrb.mxu1 %v59_v21  ;;  %208 = vmatpush.msrb.mxu2 %v183_v42 }
  0x29   :  { %91 = vmatmul.f32.gmra.mxu0 %v27_v22  ;;  %97 = vmatmul.f32.gmra.mxu1 %v29_v23 }
  0x2a   :  { %117 = vmatpush.msrb.mxu1 %v57_v24  ;;  %209 = vmatpush.msrb.mxu2 %v182_v43  ;;  %v69_v24 = vperm.slane %v66_v3, 1 }
  0x2b   :  { %109 = vmatmul.f32.gmra.mxu2 %v33_v39  ;;  %256 = vmatpush.msra.mxu3 %v192_v1 }
  0x2c   :  { %118 = vmatpush.msrb.mxu1 %v55_v25  ;;  %210 = vmatpush.msrb.mxu2 %v181_v44 }
  0x2d   :  { %257 = vmatpush.msra.mxu3 %v191_v2  ;;  %343 = vmatpush.msrb.mxu0 %v298_v61  ;;  %v424_v2 = vld [vmem:[%s749_s4] ss:$0 sm:$0xff] }
  0x2e   :  { %119 = vmatpush.msrb.mxu1 %v53_v26  ;;  %211 = vmatpush.msrb.mxu2 %v180_v45 }
  0x2f   :  { %258 = vmatpush.msra.mxu3 %v190_v4  ;;  %344 = vmatpush.msrb.mxu0 %v297_v62 }
  0x30   :  { %120 = vmatpush.msrb.mxu1 %v51_v27  ;;  %212 = vmatpush.msrb.mxu2 %v179_v46 }
  0x31   :  { %100 = vmatmul.f32.gmra.mxu1 %v30_v28  ;;  %259 = vmatpush.msra.mxu3 %v189_v6 }
  0x32   :  { %121 = vmatpush.msrb.mxu1 %v49_v29  ;;  %213 = vmatpush.msrb.mxu2 %v178_v47 }
  0x33   :  { %260 = vmatpush.msra.mxu3 %v188_v7  ;;  %345 = vmatpush.msrb.mxu0 %v296_v63 }
  0x34   :  { %122 = vmatpush.msrb.mxu1 %v47_v30  ;;  %214 = vmatpush.msrb.mxu2 %v177_v48 }
  0x35   :  { %261 = vmatpush.msra.mxu3 %v187_v11 }
  0x36   :  { %123 = vmatpush.msrb.mxu1 %v45_v31  ;;  %215 = vmatpush.msrb.mxu2 %v176_v49 }
  0x37   :  { %262 = vmatpush.msra.mxu3 %v186_v13 }
  0x38   :  { %124 = vmatpush.msrb.mxu1 %v43_v32  ;;  %216 = vmatpush.msrb.mxu2 %v175_v50 }
  0x39   :  { %103 = vmatmul.f32.gmra.mxu1 %v31_v33 }
  0x3a   :  { %125 = vmatpush.msrb.mxu1 %v41_v34  ;;  %217 = vmatpush.msrb.mxu2 %v174_v51 }
  0x3c   :  { %126 = vmatpush.msrb.mxu1 %v39_v35  ;;  %218 = vmatpush.msrb.mxu2 %v173_v52 }
  0x3e   :  { %127 = vmatpush.msrb.mxu1 %v37_v36  ;;  %219 = vmatpush.msrb.mxu2 %v172_v53 }
  0x40   :  { %128 = vmatpush.msrb.mxu1 %v35_v37  ;;  %220 = vmatpush.msrb.mxu2 %v171_v54 }
  0x41   :  { %129 = vmatmul.f32.vlgmr.msrb.gmra.mxu1 %v26_v16 }
  0x42   :  { %221 = vmatpush.msrb.mxu2 %v170_v55 }
  0x49   :  { %132 = vmatmul.f32.gmra.mxu1 %v27_v22 }
  0x51   :  { %135 = vmatmul.f32.gmra.mxu1 %v28_v17 }
  0x59   :  { %138 = vmatmul.f32.gmra.mxu1 %v29_v23 }
  0x61   :  { %141 = vmatmul.f32.gmra.mxu1 %v30_v28 }
  0x69   :  { %144 = vmatmul.f32.gmra.mxu1 %v31_v33 }
  0x71   :  { %147 = vmatmul.f32.gmra.mxu1 %v32_v38 }
  0x79   :  { %150 = vmatmul.f32.gmra.mxu1 %v33_v39 }
  0x9e   :  { %v89_v8 = vpop.f32.mrf.mxu0  ;;  %v95_v9 = vpop.f32.mrf.mxu1 }
  0x9f   :  { %v90_v10 = vadd.f32 %v89_v8, %v68_v5  ;;  %v96_v18 = vadd.f32 %v95_v9, %v68_v5 }
  0xa1   :  { %v154_v12 = vmax.f32 %v90_v10, 0.0  ;;  %v158_v20 = vmax.f32 %v96_v18, 0.0 }
  0xa3   :  { %222 = vmatmul.f32.vlgmr.msrb.gmra.mxu2 %v154_v12 }
  0xa6   :  { %v92_v14 = vpop.f32.mrf.mxu0  ;;  %v98_v15 = vpop.f32.mrf.mxu1 }
  0xa7   :  { %v93_v16 = vadd.f32 %v92_v14, %v68_v5  ;;  %v99_v21 = vadd.f32 %v98_v15, %v68_v5  ;;  %v107_v35 = vpop.f32.mrf.mxu2 }
  0xa8   :  { %v108_v36 = vadd.f32 %v107_v35, %v68_v5 }
  0xa9   :  { %v156_v17 = vmax.f32 %v93_v16, 0.0  ;;  %v160_v23 = vmax.f32 %v99_v21, 0.0 }
  0xaa   :  { %v166_v39 = vmax.f32 %v108_v36, 0.0 }
  0xab   :  { %225 = vmatmul.f32.gmra.mxu2 %v156_v17 }
  0xae   :  { %v101_v19 = vpop.f32.mrf.mxu1 }
  0xaf   :  { %v102_v25 = vadd.f32 %v101_v19, %v68_v5  ;;  %v110_v41 = vpop.f32.mrf.mxu2 }
  0xb0   :  { %v111_v42 = vadd.f32 %v110_v41, %v68_v5  ;;  %v425_v41 = vld [vmem:[%s751_s6] ss:$0 sm:$0xff] }
  0xb1   :  { %v162_v28 = vmax.f32 %v102_v25, 0.0 }
  0xb2   :  { %v168_v45 = vmax.f32 %v111_v42, 0.0 }
  0xb3   :  { %228 = vmatmul.f32.gmra.mxu2 %v158_v20 }
  0xb6   :  { %v104_v22 = vpop.f32.mrf.mxu1 }
  0xb7   :  { %v105_v30 = vadd.f32 %v104_v22, %v68_v5 }
  0xb9   :  { %v164_v33 = vmax.f32 %v105_v30, 0.0 }
  0xbb   :  { %231 = vmatmul.f32.gmra.mxu2 %v160_v23 }
  0xbe   :  { %v130_v26 = vpop.f32.mrf.mxu1 }
  0xbf   :  { %v131_v27 = vadd.f32 %v130_v26, %v69_v24 }
  0xc1   :  { %v155_v29 = vmax.f32 %v131_v27, 0.0 }
  0xc3   :  { %234 = vmatmul.f32.gmra.mxu2 %v162_v28  ;;  %263 = vmatmul.f32.vlgmr.msra.gmra.mxu3 %v155_v29 }
  0xc6   :  { %v133_v31 = vpop.f32.mrf.mxu1 }
  0xc7   :  { %v134_v32 = vadd.f32 %v133_v31, %v69_v24 }
  0xc9   :  { %v157_v34 = vmax.f32 %v134_v32, 0.0 }
  0xcb   :  { %237 = vmatmul.f32.gmra.mxu2 %v164_v33  ;;  %266 = vmatmul.f32.gmra.mxu3 %v157_v34 }
  0xce   :  { %v136_v37 = vpop.f32.mrf.mxu1 }
  0xcf   :  { %v137_v38 = vadd.f32 %v136_v37, %v69_v24 }
  0xd1   :  { %v159_v40 = vmax.f32 %v137_v38, 0.0 }
  0xd3   :  { %269 = vmatmul.f32.gmra.mxu3 %v159_v40  ;;  %240 = vmatmul.f32.gmra.mxu2 %v166_v39 }
  0xd6   :  { %v139_v43 = vpop.f32.mrf.mxu1 }
  0xd7   :  { %v140_v44 = vadd.f32 %v139_v43, %v69_v24 }
  0xd9   :  { %v161_v46 = vmax.f32 %v140_v44, 0.0 }
  0xdb   :  { %272 = vmatmul.f32.gmra.mxu3 %v161_v46  ;;  %243 = vmatmul.f32.gmra.mxu2 %v168_v45 }
  0xde   :  { %v142_v47 = vpop.f32.mrf.mxu1 }
  0xdf   :  { %v143_v48 = vadd.f32 %v142_v47, %v69_v24 }
  0xe1   :  { %v163_v49 = vmax.f32 %v143_v48, 0.0 }
  0xe3   :  { %275 = vmatmul.f32.gmra.mxu3 %v163_v49 }
  0xe6   :  { %v145_v50 = vpop.f32.mrf.mxu1 }
  0xe7   :  { %v146_v51 = vadd.f32 %v145_v50, %v69_v24 }
  0xe9   :  { %v165_v52 = vmax.f32 %v146_v51, 0.0 }
  0xeb   :  { %278 = vmatmul.f32.gmra.mxu3 %v165_v52 }
  0xee   :  { %v148_v53 = vpop.f32.mrf.mxu1 }
  0xef   :  { %v149_v54 = vadd.f32 %v148_v53, %v69_v24 }
  0xf1   :  { %v167_v55 = vmax.f32 %v149_v54, 0.0 }
  0xf3   :  { %281 = vmatmul.f32.gmra.mxu3 %v167_v55 }
  0xf6   :  { %v151_v56 = vpop.f32.mrf.mxu1 }
  0xf7   :  { %v152_v57 = vadd.f32 %v151_v56, %v69_v24 }
  0xf9   :  { %v169_v58 = vmax.f32 %v152_v57, 0.0 }
  0xfb   :  { %284 = vmatmul.f32.gmra.mxu3 %v169_v58 }
 0x126   :  { %v223_v0 = vpop.f32.mrf.mxu2 }
 0x127   :  { %v224_v3 = vadd.f32 %v424_v2, %v223_v0 }
 0x12e   :  { %v226_v1 = vpop.f32.mrf.mxu2 }
 0x12f   :  { %v227_v8 = vadd.f32 %v424_v2, %v226_v1 }
 0x136   :  { %v229_v6 = vpop.f32.mrf.mxu2 }
 0x137   :  { %v230_v13 = vadd.f32 %v424_v2, %v229_v6 }
 0x13e   :  { %v232_v12 = vpop.f32.mrf.mxu2 }
 0x13f   :  { %v233_v18 = vadd.f32 %v424_v2, %v232_v12 }
 0x146   :  { %v264_v4 = vpop.f32.mrf.mxu3  ;;  %v235_v17 = vpop.f32.mrf.mxu2 }
 0x147   :  { %v265_v5 = vadd.f32 %v264_v4, %v224_v3  ;;  %v236_v22 = vadd.f32 %v424_v2, %v235_v17 }
 0x149   :  { %v288_v7 = vmax.f32 %v265_v5, 0.0 }
 0x14b   :  { %384 = vmatmul.msk.f32.vlgmr.msrb.gmra.mxu0 %vm305_vm0, %v288_v7 }
 0x14e   :  { %v267_v9 = vpop.f32.mrf.mxu3  ;;  %v238_v23 = vpop.f32.mrf.mxu2 }
 0x14f   :  { %v268_v10 = vadd.f32 %v267_v9, %v227_v8  ;;  %v239_v27 = vadd.f32 %v424_v2, %v238_v23 }
 0x151   :  { %v289_v11 = vmax.f32 %v268_v10, 0.0 }
 0x153   :  { %385 = vmatmul.msk.f32.gmra.mxu0 %vm305_vm0, %v289_v11 }
 0x156   :  { %v270_v14 = vpop.f32.mrf.mxu3  ;;  %v241_v29 = vpop.f32.mrf.mxu2 }
 0x157   :  { %v271_v15 = vadd.f32 %v270_v14, %v230_v13  ;;  %v242_v32 = vadd.f32 %v424_v2, %v241_v29 }
 0x159   :  { %v290_v16 = vmax.f32 %v271_v15, 0.0 }
 0x15b   :  { %386 = vmatmul.msk.f32.gmra.mxu0 %vm305_vm0, %v290_v16 }
 0x15e   :  { %v273_v19 = vpop.f32.mrf.mxu3  ;;  %v244_v35 = vpop.f32.mrf.mxu2 }
 0x15f   :  { %v274_v20 = vadd.f32 %v273_v19, %v233_v18  ;;  %v245_v37 = vadd.f32 %v424_v2, %v244_v35 }
 0x161   :  { %v291_v21 = vmax.f32 %v274_v20, 0.0 }
 0x163   :  { %387 = vmatmul.msk.f32.gmra.mxu0 %vm305_vm0, %v291_v21 }
 0x166   :  { %v276_v24 = vpop.f32.mrf.mxu3 }
 0x167   :  { %v277_v25 = vadd.f32 %v276_v24, %v236_v22 }
 0x169   :  { %v292_v26 = vmax.f32 %v277_v25, 0.0 }
 0x16b   :  { %388 = vmatmul.msk.f32.gmra.mxu0 %vm305_vm0, %v292_v26 }
 0x16e   :  { %v279_v28 = vpop.f32.mrf.mxu3 }
 0x16f   :  { %v280_v30 = vadd.f32 %v279_v28, %v239_v27 }
 0x171   :  { %v293_v31 = vmax.f32 %v280_v30, 0.0 }
 0x173   :  { %389 = vmatmul.msk.f32.gmra.mxu0 %vm305_vm0, %v293_v31 }
 0x176   :  { %v282_v33 = vpop.f32.mrf.mxu3 }
 0x177   :  { %v283_v34 = vadd.f32 %v282_v33, %v242_v32 }
 0x179   :  { %v294_v36 = vmax.f32 %v283_v34, 0.0 }
 0x17b   :  { %390 = vmatmul.msk.f32.gmra.mxu0 %vm305_vm0, %v294_v36 }
 0x17e   :  { %v285_v38 = vpop.f32.mrf.mxu3 }
 0x17f   :  { %v286_v39 = vadd.f32 %v285_v38, %v245_v37 }
 0x181   :  { %v295_v40 = vmax.f32 %v286_v39, 0.0 }
 0x183   :  { %391 = vmatmul.msk.f32.gmra.mxu0 %vm305_vm0, %v295_v40 }
 0x1c8   :  { %v347_v42 = vpop.f32.mrf.mxu0 }
 0x1c9   :  { %v348_v43 = vadd.f32 %v425_v41, %v347_v42 }
 0x1cb   :  { %372 = vst.msk [vmem:[%s753_s7] sm:$0xff] %vm371_vm1, %v348_v43 }
 0x1d0   :  { %v350_v44 = vpop.f32.mrf.mxu0 }
 0x1d1   :  { %v351_v45 = vadd.f32 %v425_v41, %v350_v44 }
 0x1d3   :  { %373 = vst.msk [vmem:[%s753_s7 + $0x8] sm:$0xff] %vm371_vm1, %v351_v45 }
 0x1d8   :  { %v353_v46 = vpop.f32.mrf.mxu0 }
 0x1d9   :  { %v354_v47 = vadd.f32 %v425_v41, %v353_v46 }
 0x1db   :  { %374 = vst.msk [vmem:[%s753_s7 + $0x10] sm:$0xff] %vm371_vm1, %v354_v47 }
 0x1e0   :  { %v356_v48 = vpop.f32.mrf.mxu0 }
 0x1e1   :  { %v357_v49 = vadd.f32 %v425_v41, %v356_v48 }
 0x1e3   :  { %375 = vst.msk [vmem:[%s753_s7 + $0x18] sm:$0xff] %vm371_vm1, %v357_v49 }
 0x1e8   :  { %v359_v50 = vpop.f32.mrf.mxu0 }
 0x1e9   :  { %v360_v51 = vadd.f32 %v425_v41, %v359_v50 }
 0x1eb   :  { %376 = vst.msk [vmem:[%s753_s7 + $0x20] sm:$0xff] %vm371_vm1, %v360_v51 }
 0x1f0   :  { %v362_v52 = vpop.f32.mrf.mxu0 }
 0x1f1   :  { %v363_v53 = vadd.f32 %v425_v41, %v362_v52 }
 0x1f3   :  { %377 = vst.msk [vmem:[%s753_s7 + $0x28] sm:$0xff] %vm371_vm1, %v363_v53 }
 0x1f8   :  { %v365_v54 = vpop.f32.mrf.mxu0 }
 0x1f9   :  { %v366_v55 = vadd.f32 %v425_v41, %v365_v54 }
 0x1fb   :  { %378 = vst.msk [vmem:[%s753_s7 + $0x30] sm:$0xff] %vm371_vm1, %v366_v55 }
 0x200   :  { %v368_v56 = vpop.f32.mrf.mxu0 }
 0x201   :  { %v369_v57 = vadd.f32 %v425_v41, %v368_v56 }
 0x203   :  { %379 = vst.msk [vmem:[%s753_s7 + $0x38] sm:$0xff] %vm371_vm1, %v369_v57 }

</bundles_post_ra>
